<compile_context>
chip_gen: v6e
topology: v6e:2x2x1
jax: 0.10.0
libtpu: 0.0.40
codegen_flags: <defaults>
</compile_context>

<pallas_src>
import functools

import jax
import jax.numpy as jnp
from jax import lax
from jax.experimental import pallas as pl
from jax.experimental.pallas import tpu as pltpu


def _round_up(n, m):
    return ((n + m - 1) // m) * m


def rbfn_kernel(x_ref, wh_ref, w2_ref, wo_ref, x2_ref, bo_ref,
                out_ref, xw_ref, acc_ref):
    # x_ref:  (tb, tk)  bf16 input tile
    # wh_ref: (th, tk)  bf16 RBF-center tile (hidden.weight)
    # w2_ref: (1, th)   f32  precomputed ||w_j||^2 for this H tile
    # wo_ref: (1, th)   f32  output.weight slice for this H tile
    # x2_ref: (tb, 1)   f32  precomputed ||x_i||^2 for this B tile
    # bo_ref: (1, 1)    f32  output.bias (SMEM scalar)
    # out_ref:(tb, 1)   f32  output block (written once, last H/K step)
    # xw_ref: (tb, th)  f32  x @ w^T accumulator across the K (feature) axis
    # acc_ref:(tb, 128) f32  lane-width output accumulator across the H axis
    hi = pl.program_id(1)
    ki = pl.program_id(2)
    nh = pl.num_programs(1)
    nk = pl.num_programs(2)

    @pl.when((hi == 0) & (ki == 0))
    def _init_acc():
        acc_ref[...] = jnp.zeros_like(acc_ref)

    @pl.when(ki == 0)
    def _init_xw():
        xw_ref[...] = jnp.zeros_like(xw_ref)

    # bf16 operands, f32 accumulation: single-pass MXU contraction.
    xw_ref[...] += lax.dot_general(
        x_ref[...], wh_ref[...], (((1,), (1,)), ((), ())),
        preferred_element_type=jnp.float32)

    @pl.when(ki == nk - 1)
    def _h_step():
        # ||x-w||^2 = ||x||^2 + ||w||^2 - 2 x.w  (clamped: bf16 xw may undershoot)
        d2 = jnp.maximum(x2_ref[...] + w2_ref[...] - 2.0 * xw_ref[...], 0.0)
        pw = jnp.exp(-d2) * wo_ref[...]                         # EUP + VPU, f32
        # Fold the (H -> 1) output Linear into the H reduction with a
        # lane-width VPU accumulator: static 128-lane chunks are pure vreg
        # adds, so no per-step cross-lane (XLU) reduce on the critical path.
        s = pw[:, 0:128]
        for j in range(1, pw.shape[1] // 128):
            s = s + pw[:, j * 128:(j + 1) * 128]
        acc_ref[...] += s

        @pl.when(hi == nh - 1)
        def _finalize():
            out_ref[...] = (jnp.sum(acc_ref[...], axis=1, keepdims=True)
                            + bo_ref[0, 0]).astype(out_ref.dtype)


@functools.partial(jax.jit, static_argnames=("tb", "th", "tk"))
def rbfn_forward(x, w_hidden, w_out, b_out, *, tb=None, th=None, tk=None):
    """x: (B, D); w_hidden: (H, D); w_out: (1, H); b_out: (1,). Returns (B, 1) f32."""
    B, D = x.shape
    H = w_hidden.shape[0]
    f32 = jnp.float32
    bf16 = jnp.bfloat16

    Dp0 = _round_up(D, 128)
    # Tile selection: large tb cuts weight re-streaming ((Bp/tb) full-weight
    # fetches); keeping >= 2 B tiles lets v7x's two TensorCores both work.
    if tb is None:
        tb = min(512, max(8, _round_up(-(-B // 2), 8)))
    tb = max(8, min(_round_up(tb, 8), _round_up(B, 8)))
    if th is None:
        th = 512                       # tb*th <= 256K elements with tb<=512
    th = max(128, min(_round_up(th, 128), _round_up(H, 128)))
    if tk is None:
        tk = 512
    tk = max(128, min(_round_up(tk, 128), Dp0))

    Bp = _round_up(B, tb)
    Hp = _round_up(H, th)
    Dp = _round_up(Dp0, tk)

    # MXU operands in bf16 (halves the dominant weight DMA, single-pass MXU);
    # norms / exp / reductions stay in f32.
    xb = x.astype(bf16)
    whb = w_hidden.astype(bf16)
    x2 = jnp.sum(x.astype(f32) ** 2, axis=1, keepdims=True)        # (B, 1)
    w2 = jnp.sum(w_hidden.astype(f32) ** 2, axis=1)[None, :]       # (1, H)
    wo = w_out.astype(f32).reshape(1, H)
    # Pad only when the shapes don't already align (skip the extra HBM pass).
    if (Bp, Dp) != (B, D):
        xb = jnp.pad(xb, ((0, Bp - B), (0, Dp - D)))
    if (Hp, Dp) != (H, D):
        whb = jnp.pad(whb, ((0, Hp - H), (0, Dp - D)))
    if Bp != B:
        x2 = jnp.pad(x2, ((0, Bp - B), (0, 0)))
    if Hp != H:
        w2 = jnp.pad(w2, ((0, 0), (0, Hp - H)))
        wo = jnp.pad(wo, ((0, 0), (0, Hp - H)))   # padded centers -> 0 weight
    bo = b_out.reshape(1, 1).astype(f32)

    grid = (Bp // tb, Hp // th, Dp // tk)

    # Explicit scoped-VMEM limit (v5e default is only 16 MiB); <= 48 MiB keeps
    # headroom under v7x's 64 MiB physical VMEM.
    blk_bytes = (2 * tb * tk * 2          # x blocks (bf16, double-buffered)
                 + 2 * th * tk * 2        # center blocks (bf16, double-buffered)
                 + 2 * 2 * 8 * th * 4     # w2 + wo blocks (sublane-padded)
                 + 4 * tb * 128 * 4       # x2 + out blocks (lane-padded)
                 + tb * th * 4            # xw scratch
                 + tb * 128 * 4)          # lane-width accumulator
    vmem_limit = int(min(48 * 1024 * 1024,
                         max(32 * 1024 * 1024, 2 * blk_bytes + 8 * 1024 * 1024)))

    cost = pl.CostEstimate(
        flops=2 * Bp * Hp * Dp + 6 * Bp * Hp,
        transcendentals=Bp * Hp,
        bytes_accessed=(Bp * Dp * 2 + (Bp // tb) * Hp * Dp * 2
                        + Bp * 4 + Hp * 8 + Bp * 4),
    )

    out = pl.pallas_call(
        rbfn_kernel,
        out_shape=jax.ShapeDtypeStruct((Bp, 1), f32),
        grid_spec=pltpu.PrefetchScalarGridSpec(
            num_scalar_prefetch=0,
            grid=grid,
            in_specs=[
                pl.BlockSpec((tb, tk), lambda bi, hi, ki: (bi, ki)),   # x (bf16)
                pl.BlockSpec((th, tk), lambda bi, hi, ki: (hi, ki)),   # centers
                pl.BlockSpec((1, th), lambda bi, hi, ki: (0, hi)),     # ||w||^2
                pl.BlockSpec((1, th), lambda bi, hi, ki: (0, hi)),     # out weight
                pl.BlockSpec((tb, 1), lambda bi, hi, ki: (bi, 0)),     # ||x||^2
                pl.BlockSpec(memory_space=pltpu.MemorySpace.SMEM),     # out bias
            ],
            out_specs=pl.BlockSpec((tb, 1), lambda bi, hi, ki: (bi, 0)),
            scratch_shapes=[
                pltpu.VMEM((tb, th), jnp.float32),    # xw accumulator over K
                pltpu.VMEM((tb, 128), jnp.float32),   # lane-width H accumulator
            ],
        ),
        compiler_params=pltpu.CompilerParams(
            dimension_semantics=("parallel", "arbitrary", "arbitrary"),
            vmem_limit_bytes=vmem_limit),
        cost_estimate=cost,
    )(xb, whb, w2, wo, x2, bo)

    return out[:B]


def rbfn_reference(x, w_hidden, w_out, b_out):
    # Plain-JAX reference mirroring the torch.cdist(p=2) ** 2 path.
    d2 = jnp.sum((x[:, None, :] - w_hidden[None, :, :]) ** 2, axis=-1)
    phi = jnp.exp(-d2)
    return phi @ w_out.T + b_out[None, :]


def _make_params(key, B, D, H):
    kx, kwh, kwo, kbo = jax.random.split(key, 4)
    # Scale x so squared distances are O(1) and the RBF activations are
    # non-trivial (unit-normal x at these D would make every phi ~ exp(-D)).
    x = (1.5 / D ** 0.5) * jax.random.normal(kx, (B, D), dtype=jnp.float32)
    bound_h = 1.0 / (D ** 0.5)
    bound_o = 1.0 / (H ** 0.5)
    w_hidden = jax.random.uniform(kwh, (H, D), minval=-bound_h, maxval=bound_h,
                                  dtype=jnp.float32)
    w_out = jax.random.uniform(kwo, (1, H), minval=-bound_o, maxval=bound_o,
                               dtype=jnp.float32)
    b_out = jax.random.uniform(kbo, (1,), minval=-bound_o, maxval=bound_o,
                               dtype=jnp.float32)
    return x, w_hidden, w_out, b_out


if __name__ == "__main__":
    key = jax.random.PRNGKey(0)
    k1, k2, k3 = jax.random.split(key, 3)

    # bf16 MXU operands: tolerances loosened vs. the all-f32 version.
    ATOL = RTOL = 2e-2

    # Small, module-consistent shapes: batch=16, input_size=32, hidden_size=64.
    B, D, H = 16, 32, 64
    x, wh, wo, bo = _make_params(k1, B, D, H)
    out = jax.block_until_ready(rbfn_forward(x, wh, wo, bo))
    ref = rbfn_reference(x, wh, wo, bo)
    assert out.shape == (B, 1), out.shape
    assert jnp.allclose(out, ref, atol=ATOL, rtol=RTOL), (out, ref)

    # Multiple B tiles and H-axis reduction tiles (with B/H remainder padding).
    B2, D2, H2 = 300, 48, 300
    x2, wh2, wo2, bo2 = _make_params(k2, B2, D2, H2)
    out2 = jax.block_until_ready(rbfn_forward(x2, wh2, wo2, bo2, tb=128, th=128))
    ref2 = rbfn_reference(x2, wh2, wo2, bo2)
    assert out2.shape == (B2, 1), out2.shape
    assert jnp.allclose(out2, ref2, atol=ATOL, rtol=RTOL)

    # Multiple K (feature-axis) tiles plus B and H tiles.
    B3, D3, H3 = 64, 300, 160
    x3, wh3, wo3, bo3 = _make_params(k3, B3, D3, H3)
    out3 = jax.block_until_ready(rbfn_forward(x3, wh3, wo3, bo3, th=128, tk=128))
    ref3 = rbfn_reference(x3, wh3, wo3, bo3)
    assert out3.shape == (B3, 1), out3.shape
    assert jnp.allclose(out3, ref3, atol=ATOL, rtol=RTOL)

    print("KERNEL_OK")
</pallas_src>

<mosaic_0001>
module attributes {stable_mosaic.version = 11 : i64} {
  func.func @rbfn_kernel(%arg0: i32, %arg1: i32, %arg2: i32, %arg3: memref<8x128xbf16, #tpu.memory_space<vmem>>, %arg4: memref<128x128xbf16, #tpu.memory_space<vmem>>, %arg5: memref<1x128xf32, #tpu.memory_space<vmem>>, %arg6: memref<1x128xf32, #tpu.memory_space<vmem>>, %arg7: memref<8x1xf32, #tpu.memory_space<vmem>>, %arg8: memref<1x1xf32, #tpu.memory_space<smem>>, %arg9: memref<8x1xf32, #tpu.memory_space<vmem>>, %arg10: memref<8x128xf32, #tpu.memory_space<vmem>>, %arg11: memref<8x128xf32, #tpu.memory_space<vmem>>) attributes {dimension_semantics = [#tpu.dimension_semantics<parallel>, #tpu.dimension_semantics<arbitrary>, #tpu.dimension_semantics<arbitrary>], iteration_bounds = array<i64: 2, 1, 1>, scalar_prefetch = 0 : i64, scratch_operands = 2 : i64, tpu.core_type = #tpu.core_type<tc>, window_params = [{transform_indices = @transform_0, window_bounds = array<i64: 8, 128>}, {transform_indices = @transform_1, window_bounds = array<i64: 128, 128>}, {transform_indices = @transform_2, window_bounds = array<i64: 1, 128>}, {transform_indices = @transform_3, window_bounds = array<i64: 1, 128>}, {transform_indices = @transform_4, window_bounds = array<i64: 8, 1>}, {transform_indices = @transform_5, window_bounds = array<i64: 1, 1>}, {transform_indices = @transform_6, window_bounds = array<i64: 8, 1>}]} {
    %c0_i32 = arith.constant 0 : i32
    %0 = arith.cmpi eq, %arg1, %c0_i32 : i32
    %c0_i32_0 = arith.constant 0 : i32
    %1 = arith.cmpi eq, %arg2, %c0_i32_0 : i32
    %2 = arith.andi %0, %1 : i1
    %3 = arith.extui %2 : i1 to i32
    %c0_i32_1 = arith.constant 0 : i32
    %4 = arith.cmpi ne, %3, %c0_i32_1 : i32
    scf.if %4 {
      %cst_13 = arith.constant 0.000000e+00 : f32
      %17 = vector.broadcast %cst_13 : f32 to vector<8x128xf32>
      %c0_14 = arith.constant 0 : index
      %c0_15 = arith.constant 0 : index
      %18 = vector.load %arg11[%c0_14, %c0_15] : memref<8x128xf32, #tpu.memory_space<vmem>>, vector<8x128xf32>
      tpu.vector_store %arg11[%c0_14, %c0_15], %17 {strides = array<i32>} : memref<8x128xf32, #tpu.memory_space<vmem>>, vector<8x128xf32>,
    } else {
    }
    %c0_i32_2 = arith.constant 0 : i32
    %5 = arith.cmpi eq, %arg2, %c0_i32_2 : i32
    %6 = arith.extui %5 : i1 to i32
    %c0_i32_3 = arith.constant 0 : i32
    %7 = arith.cmpi ne, %6, %c0_i32_3 : i32
    scf.if %7 {
      %cst_13 = arith.constant 0.000000e+00 : f32
      %17 = vector.broadcast %cst_13 : f32 to vector<8x128xf32>
      %c0_14 = arith.constant 0 : index
      %c0_15 = arith.constant 0 : index
      %18 = vector.load %arg10[%c0_14, %c0_15] : memref<8x128xf32, #tpu.memory_space<vmem>>, vector<8x128xf32>
      tpu.vector_store %arg10[%c0_14, %c0_15], %17 {strides = array<i32>} : memref<8x128xf32, #tpu.memory_space<vmem>>, vector<8x128xf32>,
    } else {
    }
    %c0 = arith.constant 0 : index
    %c0_4 = arith.constant 0 : index
    %8 = vector.load %arg10[%c0, %c0_4] : memref<8x128xf32, #tpu.memory_space<vmem>>, vector<8x128xf32>
    %c0_5 = arith.constant 0 : index
    %c0_6 = arith.constant 0 : index
    %9 = vector.load %arg3[%c0_5, %c0_6] : memref<8x128xbf16, #tpu.memory_space<vmem>>, vector<8x128xbf16>
    %c0_7 = arith.constant 0 : index
    %c0_8 = arith.constant 0 : index
    %10 = vector.load %arg4[%c0_7, %c0_8] : memref<128x128xbf16, #tpu.memory_space<vmem>>, vector<128x128xbf16>
    %cst = arith.constant dense<0.000000e+00> : vector<8x128xf32>
    %11 = tpu.matmul %9, %10, %cst {dimension_numbers = #tpu.dot_dimension_numbers<[1], [1], [0], [0], [0, 0, 1, 0], [], []>} : vector<8x128xbf16>, vector<128x128xbf16>, vector<8x128xf32> -> vector<8x128xf32>
    %12 = arith.addf %8, %11 : vector<8x128xf32>
    %c0_9 = arith.constant 0 : index
    %c0_10 = arith.constant 0 : index
    %13 = vector.load %arg10[%c0_9, %c0_10] : memref<8x128xf32, #tpu.memory_space<vmem>>, vector<8x128xf32>
    tpu.vector_store %arg10[%c0_9, %c0_10], %12 {strides = array<i32>} : memref<8x128xf32, #tpu.memory_space<vmem>>, vector<8x128xf32>,
    %c0_i32_11 = arith.constant 0 : i32
    %14 = arith.cmpi eq, %arg2, %c0_i32_11 : i32
    %15 = arith.extui %14 : i1 to i32
    %c0_i32_12 = arith.constant 0 : i32
    %16 = arith.cmpi ne, %15, %c0_i32_12 : i32
    scf.if %16 {
      %c0_13 = arith.constant 0 : index
      %c0_14 = arith.constant 0 : index
      %17 = vector.load %arg7[%c0_13, %c0_14] : memref<8x1xf32, #tpu.memory_space<vmem>>, vector<8x1xf32>
      %c0_15 = arith.constant 0 : index
      %c0_16 = arith.constant 0 : index
      %18 = vector.load %arg5[%c0_15, %c0_16] : memref<1x128xf32, #tpu.memory_space<vmem>>, vector<1x128xf32>
      %19 = vector.broadcast %17 : vector<8x1xf32> to vector<8x128xf32>
      %20 = vector.broadcast %18 : vector<1x128xf32> to vector<8x128xf32>
      %21 = arith.addf %19, %20 : vector<8x128xf32>
      %c0_17 = arith.constant 0 : index
      %c0_18 = arith.constant 0 : index
      %22 = vector.load %arg10[%c0_17, %c0_18] : memref<8x128xf32, #tpu.memory_space<vmem>>, vector<8x128xf32>
      %cst_19 = arith.constant 2.000000e+00 : f32
      %23 = vector.broadcast %cst_19 : f32 to vector<8x128xf32>
      %24 = arith.mulf %23, %22 : vector<8x128xf32>
      %25 = arith.subf %21, %24 : vector<8x128xf32>
      %cst_20 = arith.constant 0.000000e+00 : f32
      %26 = vector.broadcast %cst_20 : f32 to vector<8x128xf32>
      %27 = arith.maximumf %25, %26 : vector<8x128xf32>
      %cst_21 = arith.constant 0.000000e+00 : f32
      %28 = vector.broadcast %cst_21 : f32 to vector<8x128xf32>
      %29 = arith.subf %28, %27 : vector<8x128xf32>
      %30 = math.exp %29 : vector<8x128xf32>
      %c0_22 = arith.constant 0 : index
      %c0_23 = arith.constant 0 : index
      %31 = vector.load %arg6[%c0_22, %c0_23] : memref<1x128xf32, #tpu.memory_space<vmem>>, vector<1x128xf32>
      %32 = vector.broadcast %31 : vector<1x128xf32> to vector<8x128xf32>
      %33 = arith.mulf %30, %32 : vector<8x128xf32>
      %c0_24 = arith.constant 0 : index
      %c0_25 = arith.constant 0 : index
      %34 = vector.load %arg11[%c0_24, %c0_25] : memref<8x128xf32, #tpu.memory_space<vmem>>, vector<8x128xf32>
      %35 = arith.addf %34, %33 : vector<8x128xf32>
      %c0_26 = arith.constant 0 : index
      %c0_27 = arith.constant 0 : index
      %36 = vector.load %arg11[%c0_26, %c0_27] : memref<8x128xf32, #tpu.memory_space<vmem>>, vector<8x128xf32>
      tpu.vector_store %arg11[%c0_26, %c0_27], %35 {strides = array<i32>} : memref<8x128xf32, #tpu.memory_space<vmem>>, vector<8x128xf32>,
      %c0_i32_28 = arith.constant 0 : i32
      %37 = arith.cmpi eq, %arg1, %c0_i32_28 : i32
      %38 = arith.extui %37 : i1 to i32
      %c0_i32_29 = arith.constant 0 : i32
      %39 = arith.cmpi ne, %38, %c0_i32_29 : i32
      scf.if %39 {
        %c0_30 = arith.constant 0 : index
        %c0_31 = arith.constant 0 : index
        %40 = vector.load %arg11[%c0_30, %c0_31] : memref<8x128xf32, #tpu.memory_space<vmem>>, vector<8x128xf32>
        %cst_32 = arith.constant dense<0.000000e+00> : vector<8xf32>
        %41 = vector.multi_reduction <add>, %40, %cst_32 [1] : vector<8x128xf32> to vector<8xf32>
        %42 = vector.shape_cast %41 : vector<8xf32> to vector<8x1xf32>
        %c0_33 = arith.constant 0 : index
        %c0_34 = arith.constant 0 : index
        %43 = memref.load %arg8[%c0_33, %c0_34] : memref<1x1xf32, #tpu.memory_space<smem>>
        %44 = vector.broadcast %43 : f32 to vector<8x1xf32>
        %45 = arith.addf %42, %44 : vector<8x1xf32>
        %c0_35 = arith.constant 0 : index
        %c0_36 = arith.constant 0 : index
        %46 = vector.load %arg9[%c0_35, %c0_36] : memref<8x1xf32, #tpu.memory_space<vmem>>, vector<8x1xf32>
        tpu.vector_store %arg9[%c0_35, %c0_36], %45 {strides = array<i32>} : memref<8x1xf32, #tpu.memory_space<vmem>>, vector<8x1xf32>,
      } else {
      }
    } else {
    }
    return
  }
  func.func @transform_0(%arg0: i32, %arg1: i32, %arg2: i32) -> (i32, i32) {
    %c0_i32 = arith.constant 0 : i32
    return %arg0, %arg2 : i32, i32
  }
  func.func @transform_1(%arg0: i32, %arg1: i32, %arg2: i32) -> (i32, i32) {
    %c0_i32 = arith.constant 0 : i32
    return %arg1, %arg2 : i32, i32
  }
  func.func @transform_2(%arg0: i32, %arg1: i32, %arg2: i32) -> (i32, i32) {
    %c0_i32 = arith.constant 0 : i32
    %c0_i32_0 = arith.constant 0 : i32
    return %c0_i32, %arg1 : i32, i32
  }
  func.func @transform_3(%arg0: i32, %arg1: i32, %arg2: i32) -> (i32, i32) {
    %c0_i32 = arith.constant 0 : i32
    %c0_i32_0 = arith.constant 0 : i32
    return %c0_i32, %arg1 : i32, i32
  }
  func.func @transform_4(%arg0: i32, %arg1: i32, %arg2: i32) -> (i32, i32) {
    %c0_i32 = arith.constant 0 : i32
    %c0_i32_0 = arith.constant 0 : i32
    return %arg0, %c0_i32 : i32, i32
  }
  func.func @transform_5(%arg0: i32, %arg1: i32, %arg2: i32) -> (i32, i32) {
    %c0_i32 = arith.constant 0 : i32
    %c0_i32_0 = arith.constant 0 : i32
    %c0_i32_1 = arith.constant 0 : i32
    return %c0_i32, %c0_i32_0 : i32, i32
  }
  func.func @transform_6(%arg0: i32, %arg1: i32, %arg2: i32) -> (i32, i32) {
    %c0_i32 = arith.constant 0 : i32
    %c0_i32_0 = arith.constant 0 : i32
    return %arg0, %c0_i32 : i32, i32
  }
}

</mosaic_0001>

<bundles_post_ra>
// kernel: rbfn_forward.1
= control target key start
LH: loop header
LB: loop body
LE: loop exit
PB: predicated region body
PF: predicated region fallthrough
CT: control target
= control target key end

     0   :  { %s799_s23 = smov 0   ;;  %s801_s24 = smov 0   ;;  %s873_s0 = inlined_call_operand.vmem [shape: bf16[16,128], index: 0, kind: input, shape index: {}]   ;;  %s874_s1 = inlined_call_operand.vmem [shape: bf16[128,128], index: 1, kind: input, shape index: {}]   ;;  %s875_s2 = inlined_call_operand.vmem [shape: f32[1,128], index: 2, kind: input, shape index: {}]   ;;  %s876_s3 = inlined_call_operand.vmem [shape: f32[1,128], index: 3, kind: input, shape index: {}]   ;;  %s877_s4 = inlined_call_operand.vmem [shape: f32[16,1], index: 4, kind: input, shape index: {}]   ;;  %s878_s5 = inlined_call_operand.<no memory space> [shape: f32[1,1], index: 5, kind: input, shape index: {}]   ;;  %s879_s6 = inlined_call_operand.vmem [shape: f32[16,1], index: 6, kind: output, shape index: {}]  }
   0x1   :  { %11 = sst [smem:[#allocation4]] %s878_s5  ;;  %s803_s25 = smov 0  }
   0x2 LB: > { %s36_s5 = sadd.s32 1, %s752_s24  ;;  %p651_p0 = scmp.ge.s32.totalorder %s756_s25, 1  ;;  %s756_s25 = sphi %s803_s25, %s17_s25   ;;  %s752_s24 = sphi %s801_s24, %s881_s24   ;;  %s748_s23 = sphi %s799_s23, %s880_s23  }
   0x3   : > { %p38_p1 = scmp.ge.s32.totalorder %s36_s5, 2  ;;  %p277_p2 = scmp.lt.s32.totalorder %s756_s25, 3 }
   0x5   : > { %s883_s5 = smov (%p38_p1, %s36_s5), 0  ;;  %p278_p3 = pnand %p651_p0, %p277_p2 }
   0x6   : > { %p326_p4 = scmp.lt.s32.totalorder (!%p278_p3), %s748_s23, 1  ;;  %s517_s10 = sld [smem:[#allocation4]] (!%p278_p3) }
   0x7   : > { %281 = sbr.rel (%p278_p3) target bundleno = 437 (0x1b5), region = 44 }
   0xc   : > { %v724_v0 = vld [vmem:[%s874_s1 + $0x38] sm:$0xff]   ;;  %v758_v1 = vmov 0.0   ;;  %vm759_vm0 = vmmov 0   ;;  %v760_v2 = vmov 0   ;;  %s885_s23 = smov (!%p326_p4, %s748_s23), 1  ;;  %v725_v3 = vld [vmem:[%s874_s1 + $0x30] sm:$0xff]   ;;  %v518_v27 = vstv %s517_s10 }
   0xd   : > { %676 = vmatprep.subr.bf16.mxu0 %v758_v1  ;;  %692 = vmatprep.mubr.msk.bf16.mxu0 %vm759_vm0, %v758_v1  ;;  %s653_s30 = sshll.u32 %s885_s23, 3  ;;  %v726_v5 = vld [vmem:[%s874_s1 + $0x28] sm:$0xff]   ;;  %v727_v6 = vld [vmem:[%s874_s1 + $0x20] sm:$0xff]   ;;  %v728_v7 = vld [vmem:[%s874_s1 + $0x18] sm:$0xff]   ;;  %s652_s22 = sshll.u32 %s885_s23, 2  ;;  %vm520_vm1 = vcmask 7168  }
   0xe   : > { %677 = vmatpush3.bf16.xpose.msra.mxu0 %v724_v0  ;;  %723 = vset.pattern.permute.xlu0 %v760_v2  ;;  %s351_s9 = scalar_lea.vmem %s877_s4, %s653_s30  ;;  %v729_v8 = vld [vmem:[%s874_s1 + $0x10] sm:$0xff]   ;;  %v730_v9 = vld [vmem:[%s874_s1 + $0x8] sm:$0xff]   ;;  %v731_v10 = vld [vmem:[%s874_s1] sm:$0xff]   ;;  %s332_s28 = scalar_lea.vmem %s873_s0, %s652_s22 }
   0xf   : > { %678 = vmatprep.subr.bf16.mxu0 %v758_v1  ;;  %v479_v4 = vld [vmem:[%s351_s9] sm:$0xff]  ;;  %s355_s13 = scalar_lea.vmem %s879_s6, %s653_s30 }
  0x10   : > { %483 = vperm.xlu0 %723, %v479_v4   ;;  %v369_v11 = vld [vmem:[%s332_s28] sm:$0xf] }
  0x11   : > { %v663_v12 = vld [vmem:[%s875_s2] ss:$0 sm:$0xff] }
  0x12   : > { %v664_v24 = vld [vmem:[%s876_s3] ss:$0 sm:$0xff] }
  0x16   : > { %679 = vmatpush3.bf16.xpose.msra.mxu0 %v725_v3 }
  0x17   : > { %680 = vmatprep.subr.bf16.mxu0 %v758_v1 }
  0x1e   : > { %681 = vmatpush3.bf16.xpose.msra.mxu0 %v726_v5 }
  0x1f   : > { %682 = vmatprep.subr.bf16.mxu0 %v758_v1 }
  0x26   : > { %683 = vmatpush3.bf16.xpose.msra.mxu0 %v727_v6 }
  0x27   : > { %684 = vmatprep.subr.bf16.mxu0 %v758_v1 }
  0x2e   : > { %685 = vmatpush3.bf16.xpose.msra.mxu0 %v728_v7 }
  0x2f   : > { %686 = vmatprep.subr.bf16.mxu0 %v758_v1 }
  0x36   : > { %687 = vmatpush3.bf16.xpose.msra.mxu0 %v729_v8 }
  0x37   : > { %688 = vmatprep.subr.bf16.mxu0 %v758_v1 }
  0x3e   : > { %689 = vmatpush3.bf16.xpose.msra.mxu0 %v730_v9 }
  0x3f   : > { %690 = vmatprep.subr.bf16.mxu0 %v758_v1 }
  0x46   : > { %691 = vmatpush3.bf16.xpose.msra.mxu0 %v731_v10 }
  0x4d   : > { %693 = vmatmul.mubr.bf16.vlgmr.msra.gmra.mxu0 %v369_v11 }
  0x8b   : > { %v484_v13 = vpop.permute.xlu0 %483 }
  0x8c   : > { %v492_v14 = vadd.f32 %v663_v12, %v484_v13 }
 0x10d   : > { %v468_v15 = vpop.f32.mrf.mxu0 }
 0x10e   : > { %v494_v16 = vmul.f32 2.0, %v468_v15 }
 0x10f   : > { %v694_v17 = vpop.f32.mrf.mxu0 }
 0x110   : > { %v495_v18 = vsub.f32 %v492_v14, %v494_v16 }
 0x111   : > { %v471_v19 = vpop.f32.mrf.mxu0 }
 0x112   : > { %v496_v20 = vmax.f32 %v495_v18, 0.0 }
 0x113   : > { %v695_v21 = vpop.f32.mrf.mxu0 }
 0x114   : > { %v497_v22 = vsub.f32 0.0, %v496_v20 }
 0x116   : > { %v498_v23 = vmul.f32 1.442695, %v497_v22 }
 0x118   : > { %732 = vpow2.f32 %v498_v23 }
 0x125   : > { %v733_v25 = vpop.eup %732 }
 0x126   : > { %v507_v26 = vmul.f32 %v733_v25, %v664_v24 }
 0x128   : > { %515 = vadd.xlane.f32.xlu0 %v507_v26 }
 0x1b1   : > { %v516_v28 = vpop.xlane.xlu0 %515 }
 0x1b2   : > { %v519_v29 = vadd.f32 %v518_v27, %v516_v28 }
 0x1b4   : > { %521 = vst.msk [vmem:[%s355_s13] sm:$0xff] %vm520_vm1, %v519_v29 }
 0x1b5 PF: > { %s17_s25 = sadd.s32 1, %s756_s25   ;;  %s880_s23 = smov %s752_s24 }
 0x1b6   : > { %p14_p5 = scmp.ge.s32.totalorder %s17_s25, 4   ;;  %s881_s24 = smov %s883_s5 }
 0x1b8   :  { %16 = sbr.rel (!%p14_p5) target bundleno = 2 (0x2), region = 102 }

</bundles_post_ra>
